<compile_context>
chip_gen: v7x
topology: tpu7x:2x2x1
jax: 0.10.0
libtpu: 0.0.40
codegen_flags: <defaults>
</compile_context>

<pallas_src>
import jax
import jax.numpy as jnp
from jax.experimental import pallas as pl
from jax.experimental.pallas import tpu as pltpu


# ----------------------------- in-kernel math -----------------------------

_INV_SQRT2 = 0.7071067811865476
_SQRT_2_OVER_PI = 0.7978845608028654


def _gelu(v, approximate):
    if approximate:
        # tanh formulation: the tanh goes to the EUP slot (co-issues with VALU/MXU).
        return 0.5 * v * (1.0 + jnp.tanh(_SQRT_2_OVER_PI * (v + 0.044715 * v * v * v)))
    # nn.GELU() default = exact erf formulation.
    return 0.5 * v * (1.0 + jax.lax.erf(v * _INV_SQRT2))


def _make_block_kernel(tile_n, col_sliced, approximate):
    def kernel(x_ref, w_ref, b_ref, o_ref):
        x = x_ref[...]                                                  # (tm, C)
        h = jnp.dot(x, w_ref[...], preferred_element_type=jnp.float32)  # MXU, f32 acc
        h = h + b_ref[...].astype(jnp.float32)
        g = _gelu(h, approximate)
        if col_sliced:
            # N is tiled: the residual needs only this output-column slab of x.
            start = pl.multiple_of(pl.program_id(1) * tile_n, tile_n)
            x_res = x_ref[:, pl.ds(start, tile_n)]
        else:
            x_res = x
        o_ref[...] = (x_res.astype(jnp.float32) + g).astype(o_ref.dtype)
    return kernel


# ------------------------------ tile pickers -------------------------------

def _sublane_for(dtype):
    dtype = jnp.dtype(dtype)
    if dtype == jnp.dtype(jnp.bfloat16):
        return 16
    if dtype.itemsize == 1:
        return 32
    return 8


def _pick_tile_m(m, sublane, tile_max):
    """Pick a row tile.  Prefers: sublane-aligned divisor of M (no padding),
    <= tile_max, and >= 2 grid steps (feeds both v7x TensorCores).
    Returns (tile_m, padded_m)."""
    if m <= sublane:
        return m, m                                   # single full block
    cap = min(tile_max, m)
    if m >= 2 * sublane:
        cap = min(cap, (m + 1) // 2)                  # aim for >= 2 grid steps
    cap = max(sublane, (cap // sublane) * sublane)
    t = cap
    while t >= sublane:
        if m % t == 0:
            return t, m                               # exact divisor: no padding
        t -= sublane
    if m <= tile_max:
        return m, m                                   # single full block, any M is legal
    # Last resort (odd M larger than tile_max): pad — costs one extra pass.
    # TODO(synk): mask the ragged tail in-kernel instead of padding.
    t = max(sublane, (min(tile_max, m) // sublane) * sublane)
    return t, pl.cdiv(m, t) * t


def _pick_tile_n(size, tile_n_max):
    if size <= tile_n_max:
        return size                                   # weight fully resident
    t = (tile_n_max // 128) * 128
    while t >= 128:
        if size % t == 0:
            return t
        t -= 128
    return size


# ------------------------------- host glue --------------------------------

def block_forward(x, w, b, *, tile_m_max=2048, tile_n_max=512,
                  io_dtype=None, approximate_gelu=False):
    """x: (..., size); w: (size, size) stored (in, out) so kernel computes x @ W
    (== PyTorch x @ W.T); b: (size,) or (1, size)."""
    size = x.shape[-1]
    assert w.shape == (size, size)
    if b.ndim == 1:
        b = b.reshape(1, size)

    lead = x.shape[:-1]
    m = 1
    for d in lead:
        m *= d
    x2 = x.reshape(m, size)

    # Optional reduced-precision HBM round trip (compute stays f32).
    if io_dtype is not None:
        io_dtype = jnp.dtype(io_dtype)
        x2 = x2.astype(io_dtype)
        w = w.astype(io_dtype)
        b = b.astype(io_dtype)
    io_dtype = x2.dtype
    itemsize = jnp.dtype(io_dtype).itemsize

    sublane = _sublane_for(io_dtype)
    tile_m, m_pad = _pick_tile_m(m, sublane, tile_m_max)
    if m_pad != m:
        x2 = jnp.pad(x2, ((0, m_pad - m), (0, 0)))

    tile_n = _pick_tile_n(size, tile_n_max)
    n_tiles = size // tile_n
    col_sliced = n_tiles > 1
    grid = (m_pad // tile_m, n_tiles)

    # Double-buffered VMEM footprint estimate; raise scoped limit only if needed.
    vmem_est = 2 * itemsize * (tile_m * size + tile_m * tile_n
                               + size * tile_n + tile_n)
    vmem_limit = None
    if vmem_est > 14 * 1024 * 1024:
        vmem_limit = min(int(vmem_est * 3 // 2), 100 * 1024 * 1024)

    cost = pl.CostEstimate(
        flops=2 * m * size * size,
        transcendentals=m * size,
        bytes_accessed=2 * m * size * itemsize + size * size * itemsize,
    )

    out = pl.pallas_call(
        _make_block_kernel(tile_n, col_sliced, approximate_gelu),
        out_shape=jax.ShapeDtypeStruct((m_pad, size), io_dtype),
        grid=grid,
        in_specs=[
            pl.BlockSpec((tile_m, size), lambda i, j: (i, 0)),   # activations (M-tiled)
            pl.BlockSpec((size, tile_n), lambda i, j: (0, j)),   # weight (N-tiled / resident)
            pl.BlockSpec((1, tile_n), lambda i, j: (0, j)),      # bias
        ],
        out_specs=pl.BlockSpec((tile_m, tile_n), lambda i, j: (i, j)),
        compiler_params=pltpu.CompilerParams(
            dimension_semantics=("parallel", "parallel"),
            vmem_limit_bytes=vmem_limit,
        ),
        cost_estimate=cost,
    )(x2, w, b)

    if m_pad != m:
        out = out[:m]
    return out.reshape(*lead, size)


def init_params(key, size):
    # Matches torch.nn.Linear default init; W stored as (in, out).
    kw, kb = jax.random.split(key)
    bound = 1.0 / (size ** 0.5)
    w = jax.random.uniform(kw, (size, size), jnp.float32, -bound, bound)
    b = jax.random.uniform(kb, (1, size), jnp.float32, -bound, bound)
    return w, b


if __name__ == "__main__":
    SIZE = 128                      # lane-dense last dim (full 128-lane stores)
    key = jax.random.PRNGKey(0)
    kx, kp = jax.random.split(key)
    x = jax.random.normal(kx, (2, 32, SIZE), jnp.float32)   # M = 64 rows total
    w, b = init_params(kp, SIZE)

    # f32 path (exact-erf GELU, matches nn.GELU() default).
    out = block_forward(x, w, b)
    jax.block_until_ready(out)
    assert out.shape == x.shape and out.dtype == x.dtype

    x2 = x.reshape(-1, SIZE)
    ref = (x2 + _gelu(x2 @ w + b, approximate=False)).reshape(x.shape)
    assert jnp.allclose(out, ref, atol=1e-4, rtol=1e-4)

    # bf16 I/O path (halved HBM traffic on v6e/v7x), f32 accumulation inside.
    out_bf16 = block_forward(x, w, b, io_dtype=jnp.bfloat16)
    jax.block_until_ready(out_bf16)
    assert out_bf16.dtype == jnp.bfloat16
    assert float(jnp.max(jnp.abs(out_bf16.astype(jnp.float32) - ref))) < 0.1

    print("KERNEL_OK")
</pallas_src>

<mosaic_0001>
module attributes {stable_mosaic.version = 11 : i64} {
  func.func @kernel(%arg0: i32, %arg1: i32, %arg2: memref<32x128xf32, #tpu.memory_space<vmem>>, %arg3: memref<128x128xf32, #tpu.memory_space<vmem>>, %arg4: memref<1x128xf32, #tpu.memory_space<vmem>>, %arg5: memref<32x128xf32, #tpu.memory_space<vmem>>) attributes {dimension_semantics = [#tpu.dimension_semantics<parallel>, #tpu.dimension_semantics<parallel>], iteration_bounds = array<i64: 2, 1>, scalar_prefetch = 0 : i64, scratch_operands = 0 : i64, tpu.core_type = #tpu.core_type<tc>, window_params = [{transform_indices = @transform_0, window_bounds = array<i64: 32, 128>}, {transform_indices = @transform_1, window_bounds = array<i64: 128, 128>}, {transform_indices = @transform_2, window_bounds = array<i64: 1, 128>}, {transform_indices = @transform_3, window_bounds = array<i64: 32, 128>}]} {
    %c0 = arith.constant 0 : index
    %c0_0 = arith.constant 0 : index
    %0 = vector.load %arg2[%c0, %c0_0] : memref<32x128xf32, #tpu.memory_space<vmem>>, vector<32x128xf32>
    %c0_1 = arith.constant 0 : index
    %c0_2 = arith.constant 0 : index
    %1 = vector.load %arg3[%c0_1, %c0_2] : memref<128x128xf32, #tpu.memory_space<vmem>>, vector<128x128xf32>
    %cst = arith.constant dense<0.000000e+00> : vector<32x128xf32>
    %2 = tpu.matmul %0, %1, %cst {dimension_numbers = #tpu.dot_dimension_numbers<[1], [0], [0], [1], [0, 0, 1, 1], [], []>} : vector<32x128xf32>, vector<128x128xf32>, vector<32x128xf32> -> vector<32x128xf32>
    %c0_3 = arith.constant 0 : index
    %c0_4 = arith.constant 0 : index
    %3 = vector.load %arg4[%c0_3, %c0_4] : memref<1x128xf32, #tpu.memory_space<vmem>>, vector<1x128xf32>
    %4 = vector.broadcast %3 : vector<1x128xf32> to vector<32x128xf32>
    %5 = arith.addf %2, %4 : vector<32x128xf32>
    %cst_5 = arith.constant 5.000000e-01 : f32
    %6 = vector.broadcast %cst_5 : f32 to vector<32x128xf32>
    %7 = arith.mulf %6, %5 : vector<32x128xf32>
    %cst_6 = arith.constant 0.707106769 : f32
    %8 = vector.broadcast %cst_6 : f32 to vector<32x128xf32>
    %9 = arith.mulf %5, %8 : vector<32x128xf32>
    %10 = math.erf %9 : vector<32x128xf32>
    %cst_7 = arith.constant 1.000000e+00 : f32
    %11 = vector.broadcast %cst_7 : f32 to vector<32x128xf32>
    %12 = arith.addf %11, %10 : vector<32x128xf32>
    %13 = arith.mulf %7, %12 : vector<32x128xf32>
    %14 = arith.addf %0, %13 : vector<32x128xf32>
    %c0_8 = arith.constant 0 : index
    %c0_9 = arith.constant 0 : index
    %15 = vector.load %arg5[%c0_8, %c0_9] : memref<32x128xf32, #tpu.memory_space<vmem>>, vector<32x128xf32>
    tpu.vector_store %arg5[%c0_8, %c0_9], %14 {strides = array<i32>} : memref<32x128xf32, #tpu.memory_space<vmem>>, vector<32x128xf32>,
    return
  }
  func.func @transform_0(%arg0: i32, %arg1: i32) -> (i32, i32) {
    %c0_i32 = arith.constant 0 : i32
    %c0_i32_0 = arith.constant 0 : i32
    return %arg0, %c0_i32 : i32, i32
  }
  func.func @transform_1(%arg0: i32, %arg1: i32) -> (i32, i32) {
    %c0_i32 = arith.constant 0 : i32
    %c0_i32_0 = arith.constant 0 : i32
    return %c0_i32, %arg1 : i32, i32
  }
  func.func @transform_2(%arg0: i32, %arg1: i32) -> (i32, i32) {
    %c0_i32 = arith.constant 0 : i32
    %c0_i32_0 = arith.constant 0 : i32
    return %c0_i32, %arg1 : i32, i32
  }
  func.func @transform_3(%arg0: i32, %arg1: i32) -> (i32, i32) {
    %c0_i32 = arith.constant 0 : i32
    return %arg0, %arg1 : i32, i32
  }
}

</mosaic_0001>

<bundles_post_ra>
// kernel: tpu_custom_call.1
= control target key start
LH: loop header
LB: loop body
LE: loop exit
PB: predicated region body
PF: predicated region fallthrough
CT: control target
= control target key end

     0   :  { %8 = vsyncpa [#allocation3], 0  ;;  %s1134_s0 = inlined_call_operand.hbm [shape: f32[64,128], index: 0, kind: input, shape index: {}]   ;;  %s1135_s1 = inlined_call_operand.hbm [shape: f32[128,128], index: 1, kind: input, shape index: {}]   ;;  %s1136_s2 = inlined_call_operand.vmem [shape: f32[1,128], index: 2, kind: input, shape index: {}]   ;;  %s1137_s3 = inlined_call_operand.hbm [shape: f32[64,128], index: 3, kind: output, shape index: {}]  }
   0x1   :  { %10 = vsyncpa [#allocation3 + $0x1], 0 }
   0x2   :  { %11 = vsyncpa [#allocation6], 0 }
   0x3   :  { %12 = vsyncpa [#allocation4], 0 }
   0x4   :  { %14 = vsyncpa [#allocation4 + $0x1], 0  ;;  %s888_s12 = smov 0   ;;  %s890_s13 = smov 0  }
   0x5   :  { %s892_s14 = smov 0   ;;  %s894_s15 = smov 0  }
   0x6   :  { %s896_s16 = smov 0   ;;  %s898_s17 = smov 0  }
   0x7 LB: > { %s503_s18 = sadd.s32 4294967295, %s859_s17   ;;  %s504_s19 = sadd.s32 4294967294, %s859_s17   ;;  %s859_s17 = sphi %s898_s17, %s20_s17   ;;  %s855_s16 = sphi %s896_s16, %s1161_s16   ;;  %s851_s15 = sphi %s894_s15, %s1160_s15   ;;  %s847_s14 = sphi %s892_s14, %s1159_s14   ;;  %s843_s13 = sphi %s890_s13, %s1158_s13   ;;  %s839_s12 = sphi %s888_s12, %s1157_s12  }
   0x8   : > { %p52_p0 = scmp.ne.s32.totalorder %s843_s13, %s839_s12  ;;  %p922_p1 = scmp.eq.s32.totalorder %s503_s18, 0 }
   0x9   : > { %p926_p2 = scmp.eq.s32.totalorder %s503_s18, 1  ;;  %p136_p3 = scmp.eq.s32.totalorder %s504_s19, 1 }
   0xa   : > { %s1142_s20 = scalar_select %p922_p1, 1, 0 }
   0xb   : > { %s1143_s21 = scalar_select %p926_p2, 1, 0 }
   0xc   : > { %p932_p4 = por %p922_p1, %p52_p0  ;;  %p505_p5 = scmp.ge.s32.totalorder %s859_s17, 1 }
   0xd   : > { %p937_p6 = por %p136_p3, %p52_p0  ;;  %p143_p7 = scmp.lt.s32.totalorder %s859_s17, 3 }
   0xe   : > { %s1144_s22 = scalar_select %p932_p4, 1, 0 }
   0xf   : > { %s1145_s23 = scalar_select %p937_p6, 1, 0 }
  0x10   : > { %p942_p8 = pnand %p505_p5, %p143_p7  ;;  %s861_s25 = smov [#allocation5]  }
  0x11   : > { %s157_s26 = sshll.u32 %s861_s25, 4  ;;  %s32_s28 = sadd.s32 1, %s855_s16  ;;  %s158_s26 = int_to_ptr.vmem [resolvable:$true] %s157_s26 }
  0x12   : > { %s1146_s24 = scalar_select %p942_p8, 1, 0 }
  0x13   : > { %p638_p9 = pneg %p942_p8  ;;  %s715_s4 = scalar_lea.hbm %s1135_s1, 2048 }
  0x14   : > { %p716_p12 = scmp.ne.s32.totalorder %s1135_s1, %s715_s4  ;;  %p722_p5 = scmp.lt.u32.totalorder %s715_s4, %s1135_s1 }
  0x15   : > { %p951_p11 = pnand %p638_p9, %p922_p1 }
  0x17   : > { %p717_p13 = pneg %p951_p11 }
  0x19   : > { %p718_p0 = pnand %p717_p13, %p716_p12 }
  0x1b   : > { %p719_p3 = pneg %p718_p0 }
  0x1d   : > { %p724_p7 = pnand %p722_p5, %p719_p3 }
  0x1f   : > { %727 = shalt.err (!%p724_p7)
}
  0x20   : > { %s728_s9 = scalar_lea.vmem %s158_s26, 2048  ;;  %p736_p1 = scmp.lt.s32.totalorder %s158_s26, %s158_s26 }
  0x21   : > { %p729_p9 = scmp.ne.s32.totalorder %s158_s26, %s728_s9  ;;  %p737_p4 = scmp.lt.s32.totalorder %s728_s9, %s728_s9 }
  0x23   : > { %p731_p10 = pnand %p729_p9, %p717_p13  ;;  %p738_p8 = por %p737_p4, %p736_p1 }
  0x25   : > { %p732_p6 = pneg %p731_p10 }
  0x27   : > { %p739_p2 = pnand %p738_p8, %p732_p6 }
  0x29   : > { %742 = shalt.err (!%p739_p2)
}
  0x2a   : > { %s862_s10 = smov 128   ;;  %s863_s11 = smov 8  }
  0x2b   : > { %641 = dma.hbm_to_vmem [thread:$0]  (!%p951_p11), %s1135_s1, 2048, %s158_s26, [#allocation6], %s862_s10, %s862_s10, %s863_s11  }
  0x2c   : > { %p34_p1 = scmp.ge.s32.totalorder %s32_s28, 2  ;;  %s39_s25 = sadd.s32 1, %s847_s14 }
  0x2d   : > { %p46_p2 = scmp.ne.s32.totalorder %s847_s14, %s843_s13  ;;  %p47_p4 = scmp.eq.s32.totalorder %s859_s17, 0 }
  0x2e   : > { %s1163_s28 = smov (%p34_p1, %s32_s28), 0  ;;  %p1149_p8 = scmp.ne.s32.totalorder %s1143_s21, 0 }
  0x2f   : > { %p981_p6 = por %p47_p4, %p46_p2  ;;  %s36_s30 = ssub.s32 %s855_s16, %s1163_s28 }
  0x30   : > { %p987_p10 = por %p1149_p8, %p46_p2  ;;  %p651_p12 = scmp.lt.s32.totalorder %s859_s17, 2 }
  0x31   : > { %p37_p11 = scmp.eq.s32.totalorder %s36_s30, 0  ;;  %s177_s26 = sand.u32 1, %s847_s14  }
  0x32   : > { %s509_s4 = sshll.u32 %s177_s26, 5  ;;  %s522_s6 = sshll.u32 %s855_s16, 9 }
  0x33   : > { %s996_s5 = scalar_select %p37_p11, %s847_s14, %s39_s25  }
  0x34   : > { %s1002_s9 = scalar_lea.hbm %s1134_s0, %s522_s6  ;;  %s181_s21 = scalar_lea.vmem [#allocation2], %s509_s4 }
  0x35   : > { %s188_s18 = sshll.u32 %s181_s21, 4  ;;  %p1008_p13 = pnand %p651_p12, %p981_p6  ;;  %s1004_s18 = int_to_ptr.vmem [resolvable:$true] %s188_s18 }
  0x36   : > { %s1012_s25 = scalar_lea.sflag [#allocation3], %s177_s26  ;;  %s743_s30 = scalar_lea.hbm %s1002_s9, 512 }
  0x37   : > { %p744_p0 = scmp.ne.s32.totalorder %s1002_s9, %s743_s30  ;;  %p745_p3 = pneg %p1008_p13 }
  0x38   : > { %s748_s29 = scalar_lea.hbm %s1134_s0, 1024  ;;  %p749_p9 = scmp.lt.u32.totalorder %s1002_s9, %s1134_s0 }
  0x39   : > { %p746_p5 = pnand %p745_p3, %p744_p0  ;;  %p750_p1 = scmp.lt.u32.totalorder %s748_s29, %s743_s30 }
  0x3a   : > { %p752_p4 = scmp.lt.u32.totalorder %s743_s30, %s1002_s9 }
  0x3b   : > { %p747_p7 = pneg %p746_p5  ;;  %p751_p2 = por %p750_p1, %p749_p9 }
  0x3d   : > { %p753_p6 = por %p752_p4, %p751_p2 }
  0x3f   : > { %p754_p8 = pnand %p753_p6, %p747_p7 }
  0x41   : > { %757 = shalt.err (!%p754_p8)
}
  0x42   : > { %s758_s26 = scalar_lea.vmem %s1004_s18, 512  ;;  %s864_s21 = smov [#allocation2]  }
  0x43   : > { %p759_p12 = scmp.ne.s32.totalorder %s1004_s18, %s758_s26  ;;  %s763_s4 = sshll.u32 %s864_s21, 4  ;;  %s764_s4 = int_to_ptr.vmem [resolvable:$false] %s763_s4 }
  0x44   : > { %s765_s6 = scalar_lea.vmem %s764_s4, 1024  ;;  %p766_p5 = scmp.lt.s32.totalorder %s1004_s18, %s764_s4 }
  0x45   : > { %p761_p11 = pnand %p759_p12, %p745_p3  ;;  %p767_p9 = scmp.lt.s32.totalorder %s765_s6, %s758_s26 }
  0x47   : > { %p762_p0 = pneg %p761_p11  ;;  %p768_p1 = por %p767_p9, %p766_p5 }
  0x49   : > { %p769_p2 = pnand %p768_p1, %p762_p0 }
  0x4b   : > { %772 = shalt.err (!%p769_p2)
}
  0x4c   : > { %645 = dma.hbm_to_vmem [thread:$0]  (!%p1008_p13), %s1002_s9, 512, %s1004_s18, %s1012_s25, %s862_s10, %s862_s10, %s863_s11  }
  0x4d   : > { %p1152_p3 = scmp.ne.s32.totalorder %s1146_s24, 0 }
  0x4e   : > { %s1046_s30 = sand.u32 (!%p1152_p3), 1, %s843_s13   ;;  %p1153_p7 = scmp.ne.s32.totalorder (!%p1152_p3), %s1144_s22, 0 }
  0x4f   : > { %200 = sbr.rel (%p1152_p3) target bundleno = 376 (0x178), region = 32  ;;  %s513_s29 = sshll.u32 (!%p1152_p3), %s1046_s30, 5 }
  0x50   : > { %s203_s7 = scalar_lea.sflag (!%p1152_p3), [#allocation3], %s1046_s30  ;;  %s1052_s19 = scalar_lea.vmem (!%p1152_p3), [#allocation2], %s513_s29 }
  0x56   : > { %826 = dma.done.wait (%p1153_p7), %s203_s7, 512  }
  0x57   : > { %828 = vsyncadd (%p1153_p7), %s203_s7, 4294966784  ;;  %p1154_p13 = scmp.ne.s32.totalorder %s1142_s20, 0 }
  0x59   : > { %830 = dma.done.wait (%p1154_p13), [#allocation6], 2048  }
  0x5a   : > { %832 = vsyncadd (%p1154_p13), [#allocation6], 4294965248  ;;  %v245_v0 = vld [vmem:[#allocation5] sm:$0xff]  ;;  %v246_v1 = vld [vmem:[#allocation5 + $0x8] sm:$0xff]  ;;  %s235_s24 = scalar_lea.vmem [#allocation7], %s513_s29  ;;  %s523_s11 = sshll.u32 %s851_s15, 9 }
  0x5b   : > { %v247_v2 = vld [vmem:[#allocation5 + $0x10] sm:$0xff]  ;;  %v582_v3 = vpack.c.bf16 %v246_v1, %v245_v0  ;;  %v248_v4 = vld [vmem:[#allocation5 + $0x18] sm:$0xff]  ;;  %v249_v6 = vld [vmem:[#allocation5 + $0x20] sm:$0xff]  ;;  %s396_s10 = sshll.u32 %s235_s24, 4  ;;  %s1084_s25 = scalar_lea.hbm %s1137_s3, %s523_s11  ;;  %s1078_s10 = int_to_ptr.vmem [resolvable:$true] %s396_s10 }
  0x5c   : > { %v586_v5 = vpack.c.bf16 %v248_v4, %v247_v2  ;;  %v250_v7 = vld [vmem:[#allocation5 + $0x28] sm:$0xff]  ;;  %v1063_v9 = vld [vmem:[%s1052_s19] sm:$0xff]  ;;  %v1066_v10 = vld [vmem:[%s1052_s19 + $0x10] sm:$0xff]  ;;  %s382_s15 = scalar_lea.sflag [#allocation4], %s1046_s30  ;;  %s773_s8 = scalar_lea.vmem %s1078_s10, 512 }
  0x5d   : > { %583 = vmatprep.subr.bf16.mxu0 %v582_v3  ;;  %614 = vmatprep.subr.bf16.mxu1 %v582_v3  ;;  %v590_v8 = vpack.c.bf16 %v250_v7, %v249_v6  ;;  %v251_v11 = vld [vmem:[#allocation5 + $0x30] sm:$0xff]  ;;  %v252_v12 = vld [vmem:[#allocation5 + $0x38] sm:$0xff]  ;;  %v253_v14 = vld [vmem:[#allocation5 + $0x40] sm:$0xff]  ;;  %p774_p4 = scmp.ne.s32.totalorder %s1078_s10, %s773_s8  ;;  %s865_s26 = smov [#allocation7]  }
  0x5e   : > { %585 = vmatpush3.bf16.msra.mxu0 %v582_v3  ;;  %622 = vmatpush3.bf16.msra.mxu1 %v582_v3  ;;  %v594_v13 = vpack.c.bf16 %v252_v12, %v251_v11  ;;  %v254_v15 = vld [vmem:[#allocation5 + $0x48] sm:$0xff]  ;;  %v255_v17 = vld [vmem:[#allocation5 + $0x50] sm:$0xff]  ;;  %v256_v18 = vld [vmem:[#allocation5 + $0x58] sm:$0xff]  ;;  %s777_s21 = sshll.u32 %s865_s26, 4  ;;  %s778_s21 = int_to_ptr.vmem [resolvable:$false] %s777_s21 }
  0x5f   : > { %587 = vmatprep.subr.bf16.mxu0 %v586_v5  ;;  %615 = vmatprep.subr.bf16.mxu1 %v586_v5  ;;  %v598_v16 = vpack.c.bf16 %v254_v15, %v253_v14  ;;  %v602_v19 = vpack.c.bf16 %v256_v18, %v255_v17  ;;  %v257_v20 = vld [vmem:[#allocation5 + $0x60] sm:$0xff]  ;;  %v258_v21 = vld [vmem:[#allocation5 + $0x68] sm:$0xff]  ;;  %v259_v23 = vld [vmem:[#allocation5 + $0x70] sm:$0xff]  ;;  %p775_p6 = pnand %p774_p4, %p987_p10  ;;  %s779_s4 = scalar_lea.vmem %s778_s21, 1024 }
  0x60   : > { %576 = vmatprep.mubr.f32.mxu0 %v1063_v9  ;;  %579 = vmatprep.mubr.f32.mxu1 %v1066_v10  ;;  %v606_v22 = vpack.c.bf16 %v258_v21, %v257_v20  ;;  %v260_v24 = vld [vmem:[#allocation5 + $0x78] sm:$0xff]  ;;  %v242_v26 = vld [vmem:[%s1052_s19 + $0x8] sm:$0xff]  ;;  %v516_v28 = vld [vmem:[%s1136_s2] ss:$0 sm:$0xff]  ;;  %p780_p12 = scmp.lt.s32.totalorder %s1078_s10, %s778_s21  ;;  %p781_p11 = scmp.lt.s32.totalorder %s779_s4, %s773_s8 }
  0x61   : > { %v610_v25 = vpack.c.bf16 %v260_v24, %v259_v23  ;;  %v244_v27 = vld [vmem:[%s1052_s19 + $0x18] sm:$0xff]  ;;  %p776_p8 = pneg %p775_p6 }
  0x62   : > { %589 = vmatpush3.bf16.msra.mxu0 %v586_v5  ;;  %623 = vmatpush3.bf16.msra.mxu1 %v586_v5  ;;  %p782_p0 = por %p781_p11, %p780_p12 }
  0x63   : > { %591 = vmatprep.subr.bf16.mxu0 %v590_v8  ;;  %616 = vmatprep.subr.bf16.mxu1 %v590_v8 }
  0x64   : > { %p783_p5 = pnand %p782_p0, %p776_p8 }
  0x66   : > { %593 = vmatpush3.bf16.msra.mxu0 %v590_v8  ;;  %624 = vmatpush3.bf16.msra.mxu1 %v590_v8 }
  0x67   : > { %595 = vmatprep.subr.bf16.mxu0 %v594_v13  ;;  %617 = vmatprep.subr.bf16.mxu1 %v594_v13 }
  0x6a   : > { %597 = vmatpush3.bf16.msra.mxu0 %v594_v13  ;;  %625 = vmatpush3.bf16.msra.mxu1 %v594_v13 }
  0x6b   : > { %599 = vmatprep.subr.bf16.mxu0 %v598_v16  ;;  %618 = vmatprep.subr.bf16.mxu1 %v598_v16 }
  0x6e   : > { %601 = vmatpush3.bf16.msra.mxu0 %v598_v16  ;;  %626 = vmatpush3.bf16.msra.mxu1 %v598_v16 }
  0x6f   : > { %603 = vmatprep.subr.bf16.mxu0 %v602_v19  ;;  %619 = vmatprep.subr.bf16.mxu1 %v602_v19 }
  0x72   : > { %605 = vmatpush3.bf16.msra.mxu0 %v602_v19  ;;  %627 = vmatpush3.bf16.msra.mxu1 %v602_v19 }
  0x73   : > { %607 = vmatprep.subr.bf16.mxu0 %v606_v22  ;;  %620 = vmatprep.subr.bf16.mxu1 %v606_v22 }
  0x76   : > { %609 = vmatpush3.bf16.msra.mxu0 %v606_v22  ;;  %628 = vmatpush3.bf16.msra.mxu1 %v606_v22 }
  0x77   : > { %611 = vmatprep.subr.bf16.mxu0 %v610_v25  ;;  %621 = vmatprep.subr.bf16.mxu1 %v610_v25 }
  0x7a   : > { %613 = vmatpush3.bf16.msra.mxu0 %v610_v25  ;;  %629 = vmatpush3.bf16.msra.mxu1 %v610_v25 }
  0x7d   : > { %577 = vmatmul.mubr.f32.vlgmr.msra.gmra.mrb[0].mxu0 %v242_v26  ;;  %580 = vmatmul.mubr.f32.vlgmr.msra.gmra.mrb[0].mxu1 %v244_v27 }
 0x150   : > { %v578_v29 = vpop.f32.mrb[0].mxu0  ;;  %v581_v30 = vpop.f32.mrb[0].mxu1 }
 0x151   : > { %v340_v31 = vadd.f32 %v578_v29, %v516_v28  ;;  %v350_v32 = vadd.f32 %v581_v30, %v516_v28  ;;  %v334_v33 = vpop.f32.mrb[1].mxu0  ;;  %v344_v34 = vpop.f32.mrb[1].mxu1 }
 0x152   : > { %v335_v35 = vadd.f32 %v516_v28, %v334_v33  ;;  %v345_v36 = vadd.f32 %v516_v28, %v344_v34 }
 0x153   : > { %v358_v37 = vmul.f32 0.70710677, %v340_v31  ;;  %v360_v38 = vmul.f32 0.70710677, %v350_v32  ;;  %v354_v43 = vmul.f32 0.5, %v340_v31  ;;  %v356_v46 = vmul.f32 0.5, %v350_v32 }
 0x154   : > { %v357_v39 = vmul.f32 0.70710677, %v335_v35  ;;  %v359_v40 = vmul.f32 0.70710677, %v345_v36  ;;  %v353_v50 = vmul.f32 0.5, %v335_v35  ;;  %v355_v53 = vmul.f32 0.5, %v345_v36 }
 0x155   : > { %707 = verf.f32 %v358_v37 }
 0x156   : > { %709 = verf.f32 %v360_v38 }
 0x157   : > { %711 = verf.f32 %v357_v39 }
 0x158   : > { %713 = verf.f32 %v359_v40 }
 0x15f   : > { %v708_v41 = vpop.eup %707 }
 0x160   : > { %v710_v42 = vpop.eup %709  ;;  %v366_v44 = vadd.f32 1.0, %v708_v41 }
 0x161   : > { %v712_v45 = vpop.eup %711  ;;  %v368_v47 = vadd.f32 1.0, %v710_v42 }
 0x162   : > { %v714_v48 = vpop.eup %713  ;;  %v370_v49 = vmul.f32 %v366_v44, %v354_v43  ;;  %v365_v51 = vadd.f32 1.0, %v712_v45 }
 0x163   : > { %v372_v52 = vmul.f32 %v368_v47, %v356_v46  ;;  %v367_v54 = vadd.f32 1.0, %v714_v48 }
 0x164   : > { %v374_v55 = vadd.f32 %v370_v49, %v242_v26  ;;  %v369_v56 = vmul.f32 %v365_v51, %v353_v50 }
 0x165   : > { %v376_v57 = vadd.f32 %v372_v52, %v244_v27  ;;  %v371_v58 = vmul.f32 %v367_v54, %v355_v53 }
 0x166   : > { %378 = vst [vmem:[%s235_s24 + $0x8] sm:$0xff] %v374_v55  ;;  %v373_v59 = vadd.f32 %v369_v56, %v1063_v9 }
 0x167   : > { %380 = vst [vmem:[%s235_s24 + $0x18] sm:$0xff] %v376_v57  ;;  %v375_v60 = vadd.f32 %v371_v58, %v1066_v10 }
 0x168   : > { %377 = vst [vmem:[%s235_s24] sm:$0xff] %v373_v59 }
 0x169   : > { %379 = vst [vmem:[%s235_s24 + $0x10] sm:$0xff] %v375_v60 }
 0x16a   : > { %786 = shalt.err (!%p783_p5)
}
 0x16b   : > { %s787_s6 = scalar_lea.hbm %s1084_s25, 512  ;;  %s791_s19 = scalar_lea.hbm %s1137_s3, 1024 }
 0x16c   : > { %p788_p9 = scmp.ne.s32.totalorder %s1084_s25, %s787_s6  ;;  %p792_p3 = scmp.lt.u32.totalorder %s1084_s25, %s1137_s3 }
 0x16d   : > { %p793_p7 = scmp.lt.u32.totalorder %s791_s19, %s787_s6  ;;  %p795_p4 = scmp.lt.u32.totalorder %s787_s6, %s1084_s25 }
 0x16e   : > { %p789_p1 = pnand %p788_p9, %p987_p10 }
 0x16f   : > { %p794_p13 = por %p793_p7, %p792_p3 }
 0x170   : > { %p790_p2 = pneg %p789_p1 }
 0x171   : > { %p796_p6 = por %p795_p4, %p794_p13 }
 0x173   : > { %p797_p8 = pnand %p796_p6, %p790_p2 }
 0x175   : > { %800 = shalt.err (!%p797_p8)
}
 0x176   : > { %s866_s24 = smov 128   ;;  %s867_s11 = smov 8  }
 0x177   : > { %636 = dma.vmem_to_hbm [thread:$0]  (%p987_p10), %s1078_s10, 512, %s1084_s25, %s382_s15, %s866_s24, %s866_s24, %s867_s11  }
 0x178 PF: > { %s411_s9 = sand.u32 1, %s839_s12   ;;  %p1155_p12 = scmp.ne.s32.totalorder %s1145_s23, 0 }
 0x179   : > { %p1156_p11 = scmp.ge.s32.totalorder %s859_s17, 2  ;;  %s412_s18 = scalar_lea.sflag [#allocation4], %s411_s9 }
 0x17b   : > { %p647_p0 = pnand %p1156_p11, %p1155_p12 }
 0x17d   : > { %834 = dma.done.wait (!%p647_p0), %s412_s18, 512  }
 0x17e   : > { %836 = vsyncadd (!%p647_p0), %s412_s18, 4294966784  ;;  %s20_s17 = sadd.s32 1, %s859_s17   ;;  %s1157_s12 = smov %s843_s13 }
 0x17f   : > { %p17_p5 = scmp.ge.s32.totalorder %s20_s17, 4   ;;  %s1158_s13 = smov %s847_s14 }
 0x180   : > { %s1159_s14 = smov %s996_s5  ;;  %s1160_s15 = smov %s855_s16 }
 0x181   : > { %s1161_s16 = smov %s1163_s28  ;;  %19 = sbr.rel (!%p17_p5) target bundleno = 7 (0x7), region = 85 }
 0x188   :  { %417 = vsyncpa [#allocation3], 1 }
 0x189   :  { %419 = vsyncpa [#allocation3 + $0x1], 1 }
 0x18a   :  { %420 = vsyncpa [#allocation6], 1 }
 0x18b   :  { %421 = vsyncpa [#allocation4], 1 }
 0x18c   :  { %423 = vsyncpa [#allocation4 + $0x1], 1 }

</bundles_post_ra>
